<compile_context>
chip_gen: v7x
topology: tpu7x:2x2x1
jax: 0.10.0
libtpu: 0.0.40
codegen_flags: <defaults>
</compile_context>

<pallas_src>
import jax
import jax.numpy as jnp
from jax import lax
from jax.experimental import pallas as pl
from jax.experimental.pallas import tpu as pltpu

DIM_LATENT = 32
DIM_HIDDEN = 32
DIM_OUT = 28 * 28          # 784
NEG_SLOPE = 0.2
LN_EPS = 1e-5


def _round_up(x, m):
    return ((x + m - 1) // m) * m


def _lrelu(x):
    return jnp.where(x > 0, x, NEG_SLOPE * x)


def _hidden_layer(x, w, packed):
    """Linear -> LayerNorm (two-pass variance, matches PyTorch) -> LeakyReLU."""
    b = packed[0:1, :]
    gamma = packed[1:2, :]
    beta = packed[2:3, :]
    h = jnp.dot(x, w, preferred_element_type=jnp.float32) + b
    mu = jnp.mean(h, axis=-1, keepdims=True)
    var = jnp.mean((h - mu) * (h - mu), axis=-1, keepdims=True)
    h = (h - mu) * lax.rsqrt(var + LN_EPS) * gamma + beta
    return _lrelu(h)


def generator_kernel(z_ref,
                     w1_ref, p1_ref,
                     w2_ref, p2_ref,
                     w3_ref, p3_ref,
                     w4_ref, b4_ref,
                     out_ref):
    x = z_ref[...]
    h = _hidden_layer(x, w1_ref[...], p1_ref[...])
    h = _hidden_layer(h, w2_ref[...], p2_ref[...])
    h = _hidden_layer(h, w3_ref[...], p3_ref[...])
    # Output layer (no norm / activation): bf16 operands on the MXU, f32 accumulate.
    out_ref[...] = (jnp.dot(h.astype(jnp.bfloat16), w4_ref[...],
                            preferred_element_type=jnp.float32)
                    + b4_ref[...]).astype(out_ref.dtype)


def init_params(key):
    """Deterministic init mimicking PyTorch nn.Linear default (U(-1/sqrt(in), 1/sqrt(in)))."""
    dims = [DIM_LATENT, DIM_HIDDEN, DIM_HIDDEN * 2, DIM_HIDDEN * 4, DIM_OUT]
    params = []
    for i in range(4):
        d_in, d_out = dims[i], dims[i + 1]
        key, kw, kb = jax.random.split(key, 3)
        bound = 1.0 / jnp.sqrt(float(d_in))
        w = jax.random.uniform(kw, (d_in, d_out), jnp.float32, -bound, bound)
        b = jax.random.uniform(kb, (1, d_out), jnp.float32, -bound, bound)
        params.append((w, b))
        if i < 3:
            # LayerNorm affine params (gamma=1, beta=0)
            params.append((jnp.ones((1, d_out), jnp.float32),
                           jnp.zeros((1, d_out), jnp.float32)))
    return params


def prepare_params(params):
    """One-time param prep (hoisted out of the forward):
    pack (bias, gamma, beta) per hidden layer into one [3, d] array and
    pre-cast the final-layer weight to bf16 for the MXU."""
    (w1, b1), (g1, be1), (w2, b2), (g2, be2), (w3, b3), (g3, be3), (w4, b4) = params
    p1 = jnp.concatenate([b1, g1, be1], axis=0)   # (3, 32)
    p2 = jnp.concatenate([b2, g2, be2], axis=0)   # (3, 64)
    p3 = jnp.concatenate([b3, g3, be3], axis=0)   # (3, 128)
    w4b = w4.astype(jnp.bfloat16)                 # (128, 784) bf16
    return [w1, p1, w2, p2, w3, p3, w4b, b4]


def generator_forward(z, prepared, *, tb=1024):
    B = z.shape[0]

    # Tile count: >= 2 (and even) tiles when there is enough batch to split,
    # so the "parallel" batch axis can shard across both v7x TensorCores and
    # the pipeline overlaps writeback/compute.  Tiny batches use one tile.
    if B >= 16:
        n_tiles = max(2, -(-B // tb))
        if n_tiles % 2:
            n_tiles += 1
    else:
        n_tiles = 1
    TB = _round_up(-(-B // n_tiles), 8)
    B_pad = TB * n_tiles
    if B_pad != B:
        z = jnp.pad(z, ((0, B_pad - B), (0, 0)))

    w1, p1, w2, p2, w3, p3, w4b, b4 = prepared
    weights = [w1, p1, w2, p2, w3, p3, w4b, b4]

    z_spec = pl.BlockSpec((TB, DIM_LATENT), lambda i: (i, 0))
    # Weights / packed params: full array, same block every grid step
    # -> VMEM-resident across the whole batch loop.
    weight_specs = [pl.BlockSpec(a.shape, lambda i: (0, 0)) for a in weights]
    # Output written at its native 784 width (last dim == full array dim);
    # no pad + wrapper slice -> output HBM bytes are written exactly once.
    out_spec = pl.BlockSpec((TB, DIM_OUT), lambda i: (i, 0))

    out = pl.pallas_call(
        generator_kernel,
        out_shape=jax.ShapeDtypeStruct((B_pad, DIM_OUT), jnp.float32),
        grid=(n_tiles,),
        in_specs=[z_spec] + weight_specs,
        out_specs=out_spec,
        compiler_params=pltpu.CompilerParams(
            dimension_semantics=("parallel",)),
    )(z, *weights)

    if B_pad != B:
        out = out[:B]
    return out


def generator_forward_ref(z, params):
    """Pure-JAX f32 reference (matches PyTorch semantics)."""
    (w1, b1), (g1, be1), (w2, b2), (g2, be2), (w3, b3), (g3, be3), (w4, b4) = params

    def ln(x, g, b):
        mu = jnp.mean(x, axis=-1, keepdims=True)
        var = jnp.mean((x - mu) * (x - mu), axis=-1, keepdims=True)
        return (x - mu) * lax.rsqrt(var + LN_EPS) * g + b

    h = _lrelu(ln(z @ w1 + b1, g1, be1))
    h = _lrelu(ln(h @ w2 + b2, g2, be2))
    h = _lrelu(ln(h @ w3 + b3, g3, be3))
    return h @ w4 + b4


if __name__ == "__main__":
    key = jax.random.PRNGKey(0)
    key, kz1, kz2 = jax.random.split(key, 3)

    params = init_params(key)
    prepared = prepare_params(params)

    # Small primary test: batch=8 (single tile, no padding).
    B = 8
    z = jax.random.normal(kz1, (B, DIM_LATENT), jnp.float32)
    out = jax.block_until_ready(generator_forward(z, prepared))
    ref = generator_forward_ref(z, params)
    assert out.shape == (B, DIM_OUT)
    # Final matmul runs in bf16 (f32 accumulate) -> tolerance loosened accordingly.
    assert jnp.allclose(out, ref, atol=2e-2, rtol=2e-2), "mismatch vs. JAX reference (B=8)"

    # Secondary check: multi-tile grid + batch padding path (tb=16 -> 4 tiles).
    B2 = 40
    z2 = jax.random.normal(kz2, (B2, DIM_LATENT), jnp.float32)
    out2 = jax.block_until_ready(generator_forward(z2, prepared, tb=16))
    ref2 = generator_forward_ref(z2, params)
    assert out2.shape == (B2, DIM_OUT)
    assert jnp.allclose(out2, ref2, atol=2e-2, rtol=2e-2), "mismatch vs. JAX reference (B=40)"

    print("KERNEL_OK")
</pallas_src>

<mosaic_0001>
module attributes {stable_mosaic.version = 11 : i64} {
  func.func @generator_kernel(%arg0: i32, %arg1: memref<8x32xf32, #tpu.memory_space<vmem>>, %arg2: memref<32x32xf32, #tpu.memory_space<vmem>>, %arg3: memref<3x32xf32, #tpu.memory_space<vmem>>, %arg4: memref<32x64xf32, #tpu.memory_space<vmem>>, %arg5: memref<3x64xf32, #tpu.memory_space<vmem>>, %arg6: memref<64x128xf32, #tpu.memory_space<vmem>>, %arg7: memref<3x128xf32, #tpu.memory_space<vmem>>, %arg8: memref<128x784xbf16, #tpu.memory_space<vmem>>, %arg9: memref<1x784xf32, #tpu.memory_space<vmem>>, %arg10: memref<8x784xf32, #tpu.memory_space<vmem>>) attributes {dimension_semantics = [#tpu.dimension_semantics<parallel>], iteration_bounds = array<i64: 1>, scalar_prefetch = 0 : i64, scratch_operands = 0 : i64, tpu.core_type = #tpu.core_type<tc>, window_params = [{transform_indices = @transform_0, window_bounds = array<i64: 8, 32>}, {pipeline_mode = #tpu.pipeline_mode<synchronous>, transform_indices = @transform_1, window_bounds = array<i64: 32, 32>}, {pipeline_mode = #tpu.pipeline_mode<synchronous>, transform_indices = @transform_2, window_bounds = array<i64: 3, 32>}, {pipeline_mode = #tpu.pipeline_mode<synchronous>, transform_indices = @transform_3, window_bounds = array<i64: 32, 64>}, {pipeline_mode = #tpu.pipeline_mode<synchronous>, transform_indices = @transform_4, window_bounds = array<i64: 3, 64>}, {pipeline_mode = #tpu.pipeline_mode<synchronous>, transform_indices = @transform_5, window_bounds = array<i64: 64, 128>}, {pipeline_mode = #tpu.pipeline_mode<synchronous>, transform_indices = @transform_6, window_bounds = array<i64: 3, 128>}, {pipeline_mode = #tpu.pipeline_mode<synchronous>, transform_indices = @transform_7, window_bounds = array<i64: 128, 784>}, {pipeline_mode = #tpu.pipeline_mode<synchronous>, transform_indices = @transform_8, window_bounds = array<i64: 1, 784>}, {transform_indices = @transform_9, window_bounds = array<i64: 8, 784>}]} {
    %c0 = arith.constant 0 : index
    %c0_0 = arith.constant 0 : index
    %0 = vector.load %arg1[%c0, %c0_0] : memref<8x32xf32, #tpu.memory_space<vmem>>, vector<8x32xf32>
    %c0_1 = arith.constant 0 : index
    %c0_2 = arith.constant 0 : index
    %1 = vector.load %arg2[%c0_1, %c0_2] : memref<32x32xf32, #tpu.memory_space<vmem>>, vector<32x32xf32>
    %c0_3 = arith.constant 0 : index
    %c0_4 = arith.constant 0 : index
    %2 = vector.load %arg3[%c0_3, %c0_4] : memref<3x32xf32, #tpu.memory_space<vmem>>, vector<3x32xf32>
    %3 = vector.extract_strided_slice %2 {offsets = [0, 0], sizes = [1, 32], strides = [1, 1]} : vector<3x32xf32> to vector<1x32xf32>
    %4 = vector.extract_strided_slice %2 {offsets = [1, 0], sizes = [1, 32], strides = [1, 1]} : vector<3x32xf32> to vector<1x32xf32>
    %5 = vector.extract_strided_slice %2 {offsets = [2, 0], sizes = [1, 32], strides = [1, 1]} : vector<3x32xf32> to vector<1x32xf32>
    %cst = arith.constant dense<0.000000e+00> : vector<8x32xf32>
    %6 = tpu.matmul %0, %1, %cst {dimension_numbers = #tpu.dot_dimension_numbers<[1], [0], [0], [1], [0, 0, 1, 1], [], []>} : vector<8x32xf32>, vector<32x32xf32>, vector<8x32xf32> -> vector<8x32xf32>
    %7 = vector.broadcast %3 : vector<1x32xf32> to vector<8x32xf32>
    %8 = arith.addf %6, %7 : vector<8x32xf32>
    %cst_5 = arith.constant dense<0.000000e+00> : vector<8xf32>
    %9 = vector.multi_reduction <add>, %8, %cst_5 [1] : vector<8x32xf32> to vector<8xf32>
    %10 = vector.shape_cast %9 : vector<8xf32> to vector<8x1xf32>
    %cst_6 = arith.constant 3.200000e+01 : f32
    %11 = vector.broadcast %cst_6 : f32 to vector<8x1xf32>
    %12 = arith.divf %10, %11 : vector<8x1xf32>
    %13 = vector.broadcast %12 : vector<8x1xf32> to vector<8x32xf32>
    %14 = arith.subf %8, %13 : vector<8x32xf32>
    %15 = vector.broadcast %12 : vector<8x1xf32> to vector<8x32xf32>
    %16 = arith.subf %8, %15 : vector<8x32xf32>
    %17 = arith.mulf %14, %16 : vector<8x32xf32>
    %cst_7 = arith.constant dense<0.000000e+00> : vector<8xf32>
    %18 = vector.multi_reduction <add>, %17, %cst_7 [1] : vector<8x32xf32> to vector<8xf32>
    %19 = vector.shape_cast %18 : vector<8xf32> to vector<8x1xf32>
    %cst_8 = arith.constant 3.200000e+01 : f32
    %20 = vector.broadcast %cst_8 : f32 to vector<8x1xf32>
    %21 = arith.divf %19, %20 : vector<8x1xf32>
    %22 = vector.broadcast %12 : vector<8x1xf32> to vector<8x32xf32>
    %23 = arith.subf %8, %22 : vector<8x32xf32>
    %cst_9 = arith.constant 9.99999974E-6 : f32
    %24 = vector.broadcast %cst_9 : f32 to vector<8x1xf32>
    %25 = arith.addf %21, %24 : vector<8x1xf32>
    %26 = math.rsqrt %25 : vector<8x1xf32>
    %27 = vector.broadcast %26 : vector<8x1xf32> to vector<8x32xf32>
    %28 = arith.mulf %23, %27 : vector<8x32xf32>
    %29 = vector.broadcast %4 : vector<1x32xf32> to vector<8x32xf32>
    %30 = arith.mulf %28, %29 : vector<8x32xf32>
    %31 = vector.broadcast %5 : vector<1x32xf32> to vector<8x32xf32>
    %32 = arith.addf %30, %31 : vector<8x32xf32>
    %cst_10 = arith.constant 0.000000e+00 : f32
    %33 = vector.broadcast %cst_10 : f32 to vector<8x32xf32>
    %34 = arith.cmpf ogt, %32, %33 : vector<8x32xf32>
    %cst_11 = arith.constant 2.000000e-01 : f32
    %35 = vector.broadcast %cst_11 : f32 to vector<8x32xf32>
    %36 = arith.mulf %35, %32 : vector<8x32xf32>
    %37 = arith.select %34, %32, %36 : vector<8x32xi1>, vector<8x32xf32>
    %c0_12 = arith.constant 0 : index
    %c0_13 = arith.constant 0 : index
    %38 = vector.load %arg4[%c0_12, %c0_13] : memref<32x64xf32, #tpu.memory_space<vmem>>, vector<32x64xf32>
    %c0_14 = arith.constant 0 : index
    %c0_15 = arith.constant 0 : index
    %39 = vector.load %arg5[%c0_14, %c0_15] : memref<3x64xf32, #tpu.memory_space<vmem>>, vector<3x64xf32>
    %40 = vector.extract_strided_slice %39 {offsets = [0, 0], sizes = [1, 64], strides = [1, 1]} : vector<3x64xf32> to vector<1x64xf32>
    %41 = vector.extract_strided_slice %39 {offsets = [1, 0], sizes = [1, 64], strides = [1, 1]} : vector<3x64xf32> to vector<1x64xf32>
    %42 = vector.extract_strided_slice %39 {offsets = [2, 0], sizes = [1, 64], strides = [1, 1]} : vector<3x64xf32> to vector<1x64xf32>
    %cst_16 = arith.constant dense<0.000000e+00> : vector<8x64xf32>
    %43 = tpu.matmul %37, %38, %cst_16 {dimension_numbers = #tpu.dot_dimension_numbers<[1], [0], [0], [1], [0, 0, 1, 1], [], []>} : vector<8x32xf32>, vector<32x64xf32>, vector<8x64xf32> -> vector<8x64xf32>
    %44 = vector.broadcast %40 : vector<1x64xf32> to vector<8x64xf32>
    %45 = arith.addf %43, %44 : vector<8x64xf32>
    %cst_17 = arith.constant dense<0.000000e+00> : vector<8xf32>
    %46 = vector.multi_reduction <add>, %45, %cst_17 [1] : vector<8x64xf32> to vector<8xf32>
    %47 = vector.shape_cast %46 : vector<8xf32> to vector<8x1xf32>
    %cst_18 = arith.constant 6.400000e+01 : f32
    %48 = vector.broadcast %cst_18 : f32 to vector<8x1xf32>
    %49 = arith.divf %47, %48 : vector<8x1xf32>
    %50 = vector.broadcast %49 : vector<8x1xf32> to vector<8x64xf32>
    %51 = arith.subf %45, %50 : vector<8x64xf32>
    %52 = vector.broadcast %49 : vector<8x1xf32> to vector<8x64xf32>
    %53 = arith.subf %45, %52 : vector<8x64xf32>
    %54 = arith.mulf %51, %53 : vector<8x64xf32>
    %cst_19 = arith.constant dense<0.000000e+00> : vector<8xf32>
    %55 = vector.multi_reduction <add>, %54, %cst_19 [1] : vector<8x64xf32> to vector<8xf32>
    %56 = vector.shape_cast %55 : vector<8xf32> to vector<8x1xf32>
    %cst_20 = arith.constant 6.400000e+01 : f32
    %57 = vector.broadcast %cst_20 : f32 to vector<8x1xf32>
    %58 = arith.divf %56, %57 : vector<8x1xf32>
    %59 = vector.broadcast %49 : vector<8x1xf32> to vector<8x64xf32>
    %60 = arith.subf %45, %59 : vector<8x64xf32>
    %cst_21 = arith.constant 9.99999974E-6 : f32
    %61 = vector.broadcast %cst_21 : f32 to vector<8x1xf32>
    %62 = arith.addf %58, %61 : vector<8x1xf32>
    %63 = math.rsqrt %62 : vector<8x1xf32>
    %64 = vector.broadcast %63 : vector<8x1xf32> to vector<8x64xf32>
    %65 = arith.mulf %60, %64 : vector<8x64xf32>
    %66 = vector.broadcast %41 : vector<1x64xf32> to vector<8x64xf32>
    %67 = arith.mulf %65, %66 : vector<8x64xf32>
    %68 = vector.broadcast %42 : vector<1x64xf32> to vector<8x64xf32>
    %69 = arith.addf %67, %68 : vector<8x64xf32>
    %cst_22 = arith.constant 0.000000e+00 : f32
    %70 = vector.broadcast %cst_22 : f32 to vector<8x64xf32>
    %71 = arith.cmpf ogt, %69, %70 : vector<8x64xf32>
    %cst_23 = arith.constant 2.000000e-01 : f32
    %72 = vector.broadcast %cst_23 : f32 to vector<8x64xf32>
    %73 = arith.mulf %72, %69 : vector<8x64xf32>
    %74 = arith.select %71, %69, %73 : vector<8x64xi1>, vector<8x64xf32>
    %c0_24 = arith.constant 0 : index
    %c0_25 = arith.constant 0 : index
    %75 = vector.load %arg6[%c0_24, %c0_25] : memref<64x128xf32, #tpu.memory_space<vmem>>, vector<64x128xf32>
    %c0_26 = arith.constant 0 : index
    %c0_27 = arith.constant 0 : index
    %76 = vector.load %arg7[%c0_26, %c0_27] : memref<3x128xf32, #tpu.memory_space<vmem>>, vector<3x128xf32>
    %77 = vector.extract_strided_slice %76 {offsets = [0, 0], sizes = [1, 128], strides = [1, 1]} : vector<3x128xf32> to vector<1x128xf32>
    %78 = vector.extract_strided_slice %76 {offsets = [1, 0], sizes = [1, 128], strides = [1, 1]} : vector<3x128xf32> to vector<1x128xf32>
    %79 = vector.extract_strided_slice %76 {offsets = [2, 0], sizes = [1, 128], strides = [1, 1]} : vector<3x128xf32> to vector<1x128xf32>
    %cst_28 = arith.constant dense<0.000000e+00> : vector<8x128xf32>
    %80 = tpu.matmul %74, %75, %cst_28 {dimension_numbers = #tpu.dot_dimension_numbers<[1], [0], [0], [1], [0, 0, 1, 1], [], []>} : vector<8x64xf32>, vector<64x128xf32>, vector<8x128xf32> -> vector<8x128xf32>
    %81 = vector.broadcast %77 : vector<1x128xf32> to vector<8x128xf32>
    %82 = arith.addf %80, %81 : vector<8x128xf32>
    %cst_29 = arith.constant dense<0.000000e+00> : vector<8xf32>
    %83 = vector.multi_reduction <add>, %82, %cst_29 [1] : vector<8x128xf32> to vector<8xf32>
    %84 = vector.shape_cast %83 : vector<8xf32> to vector<8x1xf32>
    %cst_30 = arith.constant 1.280000e+02 : f32
    %85 = vector.broadcast %cst_30 : f32 to vector<8x1xf32>
    %86 = arith.divf %84, %85 : vector<8x1xf32>
    %87 = vector.broadcast %86 : vector<8x1xf32> to vector<8x128xf32>
    %88 = arith.subf %82, %87 : vector<8x128xf32>
    %89 = vector.broadcast %86 : vector<8x1xf32> to vector<8x128xf32>
    %90 = arith.subf %82, %89 : vector<8x128xf32>
    %91 = arith.mulf %88, %90 : vector<8x128xf32>
    %cst_31 = arith.constant dense<0.000000e+00> : vector<8xf32>
    %92 = vector.multi_reduction <add>, %91, %cst_31 [1] : vector<8x128xf32> to vector<8xf32>
    %93 = vector.shape_cast %92 : vector<8xf32> to vector<8x1xf32>
    %cst_32 = arith.constant 1.280000e+02 : f32
    %94 = vector.broadcast %cst_32 : f32 to vector<8x1xf32>
    %95 = arith.divf %93, %94 : vector<8x1xf32>
    %96 = vector.broadcast %86 : vector<8x1xf32> to vector<8x128xf32>
    %97 = arith.subf %82, %96 : vector<8x128xf32>
    %cst_33 = arith.constant 9.99999974E-6 : f32
    %98 = vector.broadcast %cst_33 : f32 to vector<8x1xf32>
    %99 = arith.addf %95, %98 : vector<8x1xf32>
    %100 = math.rsqrt %99 : vector<8x1xf32>
    %101 = vector.broadcast %100 : vector<8x1xf32> to vector<8x128xf32>
    %102 = arith.mulf %97, %101 : vector<8x128xf32>
    %103 = vector.broadcast %78 : vector<1x128xf32> to vector<8x128xf32>
    %104 = arith.mulf %102, %103 : vector<8x128xf32>
    %105 = vector.broadcast %79 : vector<1x128xf32> to vector<8x128xf32>
    %106 = arith.addf %104, %105 : vector<8x128xf32>
    %cst_34 = arith.constant 0.000000e+00 : f32
    %107 = vector.broadcast %cst_34 : f32 to vector<8x128xf32>
    %108 = arith.cmpf ogt, %106, %107 : vector<8x128xf32>
    %cst_35 = arith.constant 2.000000e-01 : f32
    %109 = vector.broadcast %cst_35 : f32 to vector<8x128xf32>
    %110 = arith.mulf %109, %106 : vector<8x128xf32>
    %111 = arith.select %108, %106, %110 : vector<8x128xi1>, vector<8x128xf32>
    %112 = arith.truncf %111 : vector<8x128xf32> to vector<8x128xbf16>
    %c0_36 = arith.constant 0 : index
    %c0_37 = arith.constant 0 : index
    %113 = vector.load %arg8[%c0_36, %c0_37] : memref<128x784xbf16, #tpu.memory_space<vmem>>, vector<128x784xbf16>
    %cst_38 = arith.constant dense<0.000000e+00> : vector<8x784xf32>
    %114 = tpu.matmul %112, %113, %cst_38 {dimension_numbers = #tpu.dot_dimension_numbers<[1], [0], [0], [1], [0, 0, 1, 1], [], []>} : vector<8x128xbf16>, vector<128x784xbf16>, vector<8x784xf32> -> vector<8x784xf32>
    %c0_39 = arith.constant 0 : index
    %c0_40 = arith.constant 0 : index
    %115 = vector.load %arg9[%c0_39, %c0_40] : memref<1x784xf32, #tpu.memory_space<vmem>>, vector<1x784xf32>
    %116 = vector.broadcast %115 : vector<1x784xf32> to vector<8x784xf32>
    %117 = arith.addf %114, %116 : vector<8x784xf32>
    %c0_41 = arith.constant 0 : index
    %c0_42 = arith.constant 0 : index
    %118 = vector.load %arg10[%c0_41, %c0_42] : memref<8x784xf32, #tpu.memory_space<vmem>>, vector<8x784xf32>
    tpu.vector_store %arg10[%c0_41, %c0_42], %117 {strides = array<i32>} : memref<8x784xf32, #tpu.memory_space<vmem>>, vector<8x784xf32>,
    return
  }
  func.func @transform_0(%arg0: i32) -> (i32, i32) {
    %c0_i32 = arith.constant 0 : i32
    %c0_i32_0 = arith.constant 0 : i32
    return %arg0, %c0_i32 : i32, i32
  }
  func.func @transform_1(%arg0: i32) -> (i32, i32) {
    %c0_i32 = arith.constant 0 : i32
    %c0_i32_0 = arith.constant 0 : i32
    %c0_i32_1 = arith.constant 0 : i32
    return %c0_i32, %c0_i32_0 : i32, i32
  }
  func.func @transform_2(%arg0: i32) -> (i32, i32) {
    %c0_i32 = arith.constant 0 : i32
    %c0_i32_0 = arith.constant 0 : i32
    %c0_i32_1 = arith.constant 0 : i32
    return %c0_i32, %c0_i32_0 : i32, i32
  }
  func.func @transform_3(%arg0: i32) -> (i32, i32) {
    %c0_i32 = arith.constant 0 : i32
    %c0_i32_0 = arith.constant 0 : i32
    %c0_i32_1 = arith.constant 0 : i32
    return %c0_i32, %c0_i32_0 : i32, i32
  }
  func.func @transform_4(%arg0: i32) -> (i32, i32) {
    %c0_i32 = arith.constant 0 : i32
    %c0_i32_0 = arith.constant 0 : i32
    %c0_i32_1 = arith.constant 0 : i32
    return %c0_i32, %c0_i32_0 : i32, i32
  }
  func.func @transform_5(%arg0: i32) -> (i32, i32) {
    %c0_i32 = arith.constant 0 : i32
    %c0_i32_0 = arith.constant 0 : i32
    %c0_i32_1 = arith.constant 0 : i32
    return %c0_i32, %c0_i32_0 : i32, i32
  }
  func.func @transform_6(%arg0: i32) -> (i32, i32) {
    %c0_i32 = arith.constant 0 : i32
    %c0_i32_0 = arith.constant 0 : i32
    %c0_i32_1 = arith.constant 0 : i32
    return %c0_i32, %c0_i32_0 : i32, i32
  }
  func.func @transform_7(%arg0: i32) -> (i32, i32) {
    %c0_i32 = arith.constant 0 : i32
    %c0_i32_0 = arith.constant 0 : i32
    %c0_i32_1 = arith.constant 0 : i32
    return %c0_i32, %c0_i32_0 : i32, i32
  }
  func.func @transform_8(%arg0: i32) -> (i32, i32) {
    %c0_i32 = arith.constant 0 : i32
    %c0_i32_0 = arith.constant 0 : i32
    %c0_i32_1 = arith.constant 0 : i32
    return %c0_i32, %c0_i32_0 : i32, i32
  }
  func.func @transform_9(%arg0: i32) -> (i32, i32) {
    %c0_i32 = arith.constant 0 : i32
    %c0_i32_0 = arith.constant 0 : i32
    return %arg0, %c0_i32 : i32, i32
  }
}

</mosaic_0001>

<bundles_post_ra>
// kernel: tpu_custom_call.1
= control target key start
LH: loop header
LB: loop body
LE: loop exit
PB: predicated region body
PF: predicated region fallthrough
CT: control target
= control target key end

     0   :  { %v1228_v3 = vmov 0.0|0.0   ;;  %vm1229_vm0 = vmmov 0   ;;  %v1230_v6 = vmov 0.0   ;;  %vm44_vm1 = vcmask 261120   ;;  %s1594_s0 = inlined_call_operand.vmem [shape: f32[8,32], index: 0, kind: input, shape index: {}]   ;;  %s1595_s1 = inlined_call_operand.vmem [shape: f32[32,32], index: 1, kind: input, shape index: {}]   ;;  %s1596_s2 = inlined_call_operand.vmem [shape: f32[3,32], index: 2, kind: input, shape index: {}]   ;;  %s1597_s3 = inlined_call_operand.vmem [shape: f32[32,64], index: 3, kind: input, shape index: {}]   ;;  %s1598_s4 = inlined_call_operand.vmem [shape: f32[3,64], index: 4, kind: input, shape index: {}]   ;;  %s1599_s5 = inlined_call_operand.vmem [shape: f32[64,128], index: 5, kind: input, shape index: {}]   ;;  %s1600_s6 = inlined_call_operand.vmem [shape: f32[3,128], index: 6, kind: input, shape index: {}]   ;;  %s1601_s7 = inlined_call_operand.vmem [shape: bf16[128,784], index: 7, kind: input, shape index: {}]   ;;  %s1602_s8 = inlined_call_operand.vmem [shape: f32[1,784], index: 8, kind: input, shape index: {}]   ;;  %s1603_s9 = inlined_call_operand.hbm [shape: f32[8,784], index: 9, kind: output, shape index: {}]  }
   0x1   :  { %v35_v0 = vld [vmem:[%s1595_s1] sm:$0xff]  ;;  %v36_v1 = vld [vmem:[%s1595_s1 + $0x8] sm:$0xff]  ;;  %v37_v2 = vld [vmem:[%s1595_s1 + $0x10] sm:$0xff]  ;;  %1089 = vmatprep.subr.bf16.mxu1 %v1228_v3  ;;  %1036 = vmatprep.mubr.msk.f32.mxu1 %vm1229_vm0, %v1230_v6 }
   0x2   :  { %v1090_v4 = vpack.c.bf16 %v36_v1, %v35_v0  ;;  %v38_v5 = vld [vmem:[%s1595_s1 + $0x18] sm:$0xff]  ;;  %1101 = vmatprep.subr.bf16.mxu0 %v1228_v3  ;;  %1066 = vmatprep.mubr.msk.f32.mxu0 %vm1229_vm0, %v1230_v6  ;;  %v34_v8 = vld [vmem:[%s1594_s0] sm:$0xff] }
   0x3   :  { %v1093_v7 = vpack.c.bf16 %v38_v5, %v37_v2 }
   0x4   :  { %1091 = vmatpush3.bf16.msra.mxu1 %v1090_v4 }
   0x5   :  { %1092 = vmatprep.subr.bf16.mxu1 %v1228_v3 }
   0x8   :  { %1094 = vmatpush3.bf16.msra.mxu1 %v1093_v7 }
   0x9   :  { %1095 = vmatprep.subr.bf16.mxu1 %v1228_v3 }
   0xb   :  { %1037 = vmatmul.mubr.msk.f32.vlgmr.msra.gmra.mrb[0].mxu1 %vm44_vm1, %v34_v8 }
   0xc   :  { %1047 = vmatprep.mubr.msk.f32.mxu1 %vm1229_vm0, %v1230_v6 }
   0xd   :  { %14 = vsyncpa [#allocation3], 0  ;;  %v40_v9 = vlaneseq  ;;  %v39_v12 = vld [vmem:[%s1596_s2] sm:$0x7]  ;;  %v146_v24 = vld [vmem:[%s1597_s3 + $0x8] sm:$0xff]  ;;  %vm227_vm3 = vcmask 523264  }
   0xe   :  { %v145_v23 = vld [vmem:[%s1597_s3] sm:$0xff]  ;;  %v147_v26 = vld [vmem:[%s1597_s3 + $0x10] sm:$0xff]  ;;  %v148_v27 = vld [vmem:[%s1597_s3 + $0x18] sm:$0xff]  ;;  %vm925_vm6 = vcmask 130048  }
   0xf   :  { %v1309_v10 = vshrl.u32 %v40_v9, 7  ;;  %v1096_v25 = vpack.c.bf16 %v146_v24, %v145_v23  ;;  %v1099_v28 = vpack.c.bf16 %v148_v27, %v147_v26  ;;  %v149_v42 = vld [vmem:[%s1598_s4] sm:$0x7]  ;;  %v256_v54 = vld [vmem:[%s1599_s5 + $0x8] sm:$0xff]  ;;  %v257_v55 = vld [vmem:[%s1599_s5 + $0x10] sm:$0xff] }
  0x10   :  { %v255_v53 = vld [vmem:[%s1599_s5] sm:$0xff]  ;;  %v258_v57 = vld [vmem:[%s1599_s5 + $0x18] sm:$0xff]  ;;  %v260_v60 = vld [vmem:[%s1599_s5 + $0x28] sm:$0xff] }
  0x11   :  { %v1312_v11 = vsub.s32 0, %v1309_v10  ;;  %1097 = vmatpush3.bf16.msra.mxu1 %v1096_v25  ;;  %v1334_v32 = vsub.s32 1, %v1309_v10  ;;  %v1337_v33 = vsub.s32 2, %v1309_v10  ;;  %v1102_v56 = vpack.c.bf16 %v256_v54, %v255_v53  ;;  %v259_v59 = vld [vmem:[%s1599_s5 + $0x20] sm:$0xff]  ;;  %v261_v62 = vld [vmem:[%s1599_s5 + $0x30] sm:$0xff]  ;;  %v262_v63 = vld [vmem:[%s1599_s5 + $0x38] sm:$0xff] }
  0x12   :  { %1098 = vmatprep.subr.bf16.mxu1 %v1228_v3  ;;  %v1105_v58 = vpack.c.bf16 %v258_v57, %v257_v55  ;;  %v1108_v61 = vpack.c.bf16 %v260_v60, %v259_v59  ;;  %v1111_v0 = vpack.c.bf16 %v262_v63, %v261_v62  ;;  %v1123_v23 = vld [vmem:[%s1601_s7 + $0xc] ss:$28 sps:$4 sm:$0xff]   ;;  %v1126_v24 = vld [vmem:[%s1601_s7 + $0x3c] ss:$28 sps:$4 sm:$0xff]   ;;  %v1129_v25 = vld [vmem:[%s1601_s7 + $0x44] ss:$28 sps:$4 sm:$0xff]  }
  0x13   :  { %v43_v13 = vrot.slane %v39_v12, %v1312_v11  ;;  %v135_v34 = vrot.slane %v39_v12, %v1334_v32  ;;  %v140_v36 = vrot.slane %v39_v12, %v1337_v33  ;;  %v153_v43 = vrot.slane %v149_v42, %v1312_v11  ;;  %1103 = vmatpush3.bf16.msra.mxu0 %v1102_v56  ;;  %v1124_v26 = vld [vmem:[%s1601_s7 + $0x38] ss:$28 sps:$4 sm:$0xff]   ;;  %v1127_v27 = vld [vmem:[%s1601_s7 + $0x40] ss:$28 sps:$4 sm:$0xff]   ;;  %v1160_v54 = vld [vmem:[%s1601_s7 + $0x188] ss:$28 sps:$4 sm:$0xff]  }
  0x14   :  { %1104 = vmatprep.subr.bf16.mxu0 %v1228_v3  ;;  %v245_v5 = vrot.slane %v149_v42, %v1334_v32  ;;  %v250_v8 = vrot.slane %v149_v42, %v1337_v33  ;;  %v1144_v42 = vld [vmem:[%s1601_s7 + $0xe4] ss:$28 sps:$4 sm:$0xff]   ;;  %v1157_v53 = vld [vmem:[%s1601_s7 + $0x158] ss:$28 sps:$4 sm:$0xff]   ;;  %v1162_v55 = vld [vmem:[%s1601_s7 + $0x18c] ss:$28 sps:$4 sm:$0xff]  }
  0x15   :  { %1100 = vmatpush3.bf16.msra.mxu1 %v1099_v28  ;;  %v1163_v56 = vld [vmem:[%s1601_s7 + $0x190] ss:$28 sps:$4 sm:$0xff]  }
  0x16   :  { %v1165_v57 = vld [vmem:[%s1601_s7 + $0x194] ss:$28 sps:$4 sm:$0xff]  }
  0x17   :  { %1106 = vmatpush3.bf16.msra.mxu0 %v1105_v58  ;;  %v1231_v58 = vmov 0   ;;  %v1168_v59 = vld [vmem:[%s1601_s7 + $0x14] ss:$28 sps:$4 sm:$0xff]  }
  0x18   :  { %1107 = vmatprep.subr.bf16.mxu0 %v1228_v3 }
  0x1b   :  { %1109 = vmatpush3.bf16.msra.mxu0 %v1108_v61 }
  0x1c   :  { %1110 = vmatprep.subr.bf16.mxu0 %v1228_v3  ;;  %v1381_v3 = vld [vmem:[%s1600_s6] sm:$0x7] }
  0x1d   :  { %v356_v63 = vrot.slane %v1381_v3, %v1334_v32 }
  0x1f   :  { %1112 = vmatpush3.bf16.msra.mxu0 %v1111_v0 }
  0x20   :  { %797 = vmatprep.subr.bf16.mxu0 %v1123_v23  ;;  %v1182_v23 = vld [vmem:[%s1601_s7 + $0xf0] ss:$28 sps:$4 sm:$0xff]  }
  0xde   :  { %v114_v14 = vpop.f32.mrb[0].mxu1 }
  0xdf   :  { %v115_v15 = vadd.f32 %v114_v14, %v43_v13  ;;  %v1038_v16 = vpop.f32.mrb[1].mxu1 }
  0xe0   :  { %v267_v16 = vrot.slane %v1381_v3, %v1312_v11 }
  0xe1   :  { %v118_v17 = vsel %vm44_vm1, %v115_v15, 0.0 }
  0xe2   :  { %119 = vadd.xlane.f32.xlu0 %v118_v17 }
 0x16f   :  { %v120_v18 = vpop.xlane.xlu0 %119 }
 0x170   :  { %v122_v19 = vmul.f32 0.03125, %v120_v18 }
 0x172   :  { %v123_v20 = vsub.f32 %v115_v15, %v122_v19 }
 0x174   :  { %v124_v21 = vmul.f32 %v123_v20, %v123_v20 }
 0x176   :  { %v125_v22 = vsel %vm44_vm1, %v124_v21, 0.0  ;;  %v1120_v21 = vld [vmem:[%s1601_s7 + $0x4] ss:$28 sps:$4 sm:$0xff]  }
 0x177   :  { %126 = vadd.xlane.f32.xlu0 %v125_v22  ;;  %v1121_v22 = vld [vmem:[%s1601_s7 + $0x8] ss:$28 sps:$4 sm:$0xff]   ;;  %756 = vmatprep.subr.bf16.mxu1 %v1120_v21  ;;  %v1181_v21 = vld [vmem:[%s1601_s7 + $0xc0] ss:$28 sps:$4 sm:$0xff]  }
 0x204   :  { %v127_v29 = vpop.xlane.xlu0 %126 }
 0x205   :  { %v128_v30 = vmul.f32 0.03125, %v127_v29 }
 0x207   :  { %v129_v31 = vadd.f32 1e-05, %v128_v30 }
 0x209   :  { %1198 = vrsqrt.f32 %v129_v31 }
 0x213   :  { %v1199_v35 = vpop.eup %1198 }
 0x214   :  { %v131_v37 = vmul.f32 %v1199_v35, %v123_v20  ;;  %v1118_v20 = vld [vmem:[%s1601_s7] ss:$28 sps:$4 sm:$0xff]  }
 0x215   :  { %v1135_v35 = vld [vmem:[%s1601_s7 + $0x7c] ss:$28 sps:$4 sm:$0xff]  }
 0x216   :  { %v136_v38 = vmul.f32 %v135_v34, %v131_v37  ;;  %v1132_v34 = vld [vmem:[%s1601_s7 + $0x74] ss:$28 sps:$4 sm:$0xff]  }
 0x217   :  { %v1133_v37 = vld [vmem:[%s1601_s7 + $0x78] ss:$28 sps:$4 sm:$0xff]  }
 0x218   :  { %v141_v39 = vadd.f32 %v140_v36, %v136_v38  ;;  %v1130_v36 = vld [vmem:[%s1601_s7 + $0x70] ss:$28 sps:$4 sm:$0xff]  }
 0x219   :  { %v1138_v38 = vld [vmem:[%s1601_s7 + $0xac] ss:$28 sps:$4 sm:$0xff]  }
 0x21a   :  { %vm142_vm2 = vcmp.gt.f32.partialorder %v141_v39, 0.0  ;;  %v143_v40 = vmul.f32 0.2, %v141_v39 }
 0x21c   :  { %v144_v41 = vsel %vm142_vm2, %v141_v39, %v143_v40  ;;  %v1141_v39 = vld [vmem:[%s1601_s7 + $0xb4] ss:$28 sps:$4 sm:$0xff]   ;;  %v1136_v40 = vld [vmem:[%s1601_s7 + $0xa8] ss:$28 sps:$4 sm:$0xff]  }
 0x21d   :  { %1048 = vmatmul.mubr.msk.f32.vlgmr.msra.gmra.mrb[2].mxu1 %vm44_vm1, %v144_v41  ;;  %v1139_v41 = vld [vmem:[%s1601_s7 + $0xb0] ss:$28 sps:$4 sm:$0xff]  }
 0x21e   :  { %757 = vmatpush1.bf16.msra.mxu1 %v1118_v20  ;;  %788 = vmatprep.mubr.bf16.mxu1 %v1231_v58  ;;  %v1178_v20 = vld [vmem:[%s1601_s7 + $0xb8] ss:$28 sps:$4 sm:$0xff]  }
 0x21f   :  { %758 = vmatprep.subr.bf16.mxu1 %v1126_v24  ;;  %v1185_v24 = vld [vmem:[%s1601_s7 + $0xf8] ss:$28 sps:$4 sm:$0xff]  }
 0x222   :  { %759 = vmatpush1.bf16.msra.mxu1 %v1124_v26  ;;  %v1186_v26 = vld [vmem:[%s1601_s7 + $0x128] ss:$28 sps:$4 sm:$0xff]  }
 0x223   :  { %760 = vmatprep.subr.bf16.mxu1 %v1132_v34  ;;  %v1194_v34 = vld [vmem:[%s1601_s7 + $0x198] ss:$28 sps:$4 sm:$0xff]  }
 0x226   :  { %761 = vmatpush1.bf16.msra.mxu1 %v1130_v36  ;;  %v431_v36 = vld [vmem:[%s1602_s8] sm:$0x7f] }
 0x227   :  { %762 = vmatprep.subr.bf16.mxu1 %v1138_v38  ;;  %v436_v38 = vrot.slane %v431_v36, %v1312_v11  ;;  %v451_v11 = vsub.s32 4, %v1309_v10 }
 0x22a   :  { %763 = vmatpush1.bf16.msra.mxu1 %v1136_v40  ;;  %v440_v40 = vrot.slane %v431_v36, %v1334_v32  ;;  %v459_v32 = vsub.s32 6, %v1309_v10 }
 0x22b   :  { %764 = vmatprep.subr.bf16.mxu1 %v1144_v42 }
 0x2f0   :  { %v223_v44 = vpop.f32.mrb[2].mxu1 }
 0x2f1   :  { %v224_v45 = vadd.f32 %v223_v44, %v153_v43  ;;  %v1049_v46 = vpop.f32.mrb[3].mxu1  ;;  %v1147_v43 = vld [vmem:[%s1601_s7 + $0xec] ss:$28 sps:$4 sm:$0xff]   ;;  %v1142_v44 = vld [vmem:[%s1601_s7 + $0xe0] ss:$28 sps:$4 sm:$0xff]  }
 0x2f2   :  { %765 = vmatpush1.bf16.msra.mxu1 %v1142_v44  ;;  %v1150_v46 = vld [vmem:[%s1601_s7 + $0x11c] ss:$28 sps:$4 sm:$0xff]  }
 0x2f3   :  { %v228_v47 = vsel %vm227_vm3, %v224_v45, 0.0  ;;  %766 = vmatprep.subr.bf16.mxu1 %v1150_v46 }
 0x2f4   :  { %229 = vadd.xlane.f32.xlu1 %v228_v47  ;;  %v1153_v47 = vld [vmem:[%s1601_s7 + $0x124] ss:$28 sps:$4 sm:$0xff]  }
 0x381   :  { %v230_v48 = vpop.xlane.xlu1 %229 }
 0x382   :  { %v232_v49 = vmul.f32 0.015625, %v230_v48  ;;  %v1148_v48 = vld [vmem:[%s1601_s7 + $0x118] ss:$28 sps:$4 sm:$0xff]  }
 0x383   :  { %767 = vmatpush1.bf16.msra.mxu1 %v1148_v48 }
 0x384   :  { %v233_v50 = vsub.f32 %v224_v45, %v232_v49  ;;  %v1145_v45 = vld [vmem:[%s1601_s7 + $0xe8] ss:$28 sps:$4 sm:$0xff]   ;;  %v1151_v49 = vld [vmem:[%s1601_s7 + $0x120] ss:$28 sps:$4 sm:$0xff]  }
 0x386   :  { %v234_v51 = vmul.f32 %v233_v50, %v233_v50 }
 0x388   :  { %v235_v52 = vsel %vm227_vm3, %v234_v51, 0.0  ;;  %v1159_v51 = vld [vmem:[%s1601_s7 + $0x15c] ss:$28 sps:$4 sm:$0xff]  }
 0x389   :  { %236 = vadd.xlane.f32.xlu1 %v235_v52  ;;  %v1154_v52 = vld [vmem:[%s1601_s7 + $0x150] ss:$28 sps:$4 sm:$0xff]  }
 0x416   :  { %v237_v1 = vpop.xlane.xlu1 %236 }
 0x417   :  { %v238_v2 = vmul.f32 0.015625, %v237_v1  ;;  %v361_v1 = vrot.slane %v1381_v3, %v1337_v33  ;;  %v1173_v3 = vld [vmem:[%s1601_s7 + $0x50] ss:$28 sps:$4 sm:$0xff]  }
 0x419   :  { %v239_v4 = vadd.f32 1e-05, %v238_v2 }
 0x41b   :  { %1200 = vrsqrt.f32 %v239_v4 }
 0x425   :  { %v1201_v7 = vpop.eup %1200 }
 0x426   :  { %v241_v9 = vmul.f32 %v1201_v7, %v233_v50  ;;  %v1156_v50 = vld [vmem:[%s1601_s7 + $0x154] ss:$28 sps:$4 sm:$0xff]  }
 0x427   :  { %768 = vmatprep.subr.bf16.mxu1 %v1156_v50 }
 0x428   :  { %v246_v12 = vmul.f32 %v245_v5, %v241_v9  ;;  %769 = vmatpush1.bf16.msra.mxu1 %v1154_v52 }
 0x429   :  { %770 = vmatprep.subr.bf16.mxu1 %v1162_v55 }
 0x42a   :  { %v251_v13 = vadd.f32 %v250_v8, %v246_v12  ;;  %v1166_v8 = vld [vmem:[%s1601_s7 + $0x10] ss:$28 sps:$4 sm:$0xff]   ;;  %v1169_v12 = vld [vmem:[%s1601_s7 + $0x18] ss:$28 sps:$4 sm:$0xff]  }
 0x42c   :  { %vm252_vm4 = vcmp.gt.f32.partialorder %v251_v13, 0.0  ;;  %v253_v14 = vmul.f32 0.2, %v251_v13  ;;  %771 = vmatpush1.bf16.msra.mxu1 %v1160_v54  ;;  %v460_v54 = vrot.slane %v431_v36, %v459_v32 }
 0x42d   :  { %838 = vmatprep.subr.bf16.mxu1 %v1168_v59 }
 0x42e   :  { %v254_v15 = vsel %vm252_vm4, %v251_v13, %v253_v14  ;;  %v1172_v14 = vld [vmem:[%s1601_s7 + $0x4c] ss:$28 sps:$4 sm:$0xff]  }
 0x42f   :  { %1067 = vmatmul.mubr.msk.f32.vlgmr.msra.gmra.mrb[0].mxu0 %vm227_vm3, %v254_v15  ;;  %v1170_v15 = vld [vmem:[%s1601_s7 + $0x48] ss:$28 sps:$4 sm:$0xff]  }
 0x430   :  { %798 = vmatpush1.bf16.msra.mxu0 %v1121_v22  ;;  %829 = vmatprep.mubr.bf16.mxu0 %v1231_v58  ;;  %v1184_v22 = vld [vmem:[%s1601_s7 + $0xf4] ss:$28 sps:$4 sm:$0xff]  }
 0x431   :  { %799 = vmatprep.subr.bf16.mxu0 %v1129_v25  ;;  %v1188_v25 = vld [vmem:[%s1601_s7 + $0x12c] ss:$28 sps:$4 sm:$0xff]  }
 0x434   :  { %800 = vmatpush1.bf16.msra.mxu0 %v1127_v27  ;;  %v1189_v27 = vld [vmem:[%s1601_s7 + $0x130] ss:$28 sps:$4 sm:$0xff]  }
 0x435   :  { %801 = vmatprep.subr.bf16.mxu0 %v1135_v35  ;;  %v1197_v35 = vld [vmem:[%s1601_s7 + $0x1a0] ss:$28 sps:$4 sm:$0xff]  }
 0x438   :  { %802 = vmatpush1.bf16.msra.mxu0 %v1133_v37  ;;  %v447_v37 = vsub.s32 3, %v1309_v10 }
 0x439   :  { %803 = vmatprep.subr.bf16.mxu0 %v1141_v39  ;;  %v444_v39 = vrot.slane %v431_v36, %v1337_v33  ;;  %v455_v33 = vsub.s32 5, %v1309_v10 }
 0x43b   :  { %v456_v55 = vrot.slane %v431_v36, %v455_v33 }
 0x43c   :  { %804 = vmatpush1.bf16.msra.mxu0 %v1139_v41  ;;  %v448_v41 = vrot.slane %v431_v36, %v447_v37 }
 0x43d   :  { %805 = vmatprep.subr.bf16.mxu0 %v1147_v43 }
 0x440   :  { %806 = vmatpush1.bf16.msra.mxu0 %v1145_v45 }
 0x441   :  { %807 = vmatprep.subr.bf16.mxu0 %v1153_v47 }
 0x444   :  { %808 = vmatpush1.bf16.msra.mxu0 %v1151_v49 }
 0x445   :  { %809 = vmatprep.subr.bf16.mxu0 %v1159_v51 }
 0x448   :  { %810 = vmatpush1.bf16.msra.mxu0 %v1157_v53  ;;  %v452_v53 = vrot.slane %v431_v36, %v451_v11 }
 0x449   :  { %811 = vmatprep.subr.bf16.mxu0 %v1165_v57 }
 0x44c   :  { %812 = vmatpush1.bf16.msra.mxu0 %v1163_v56 }
 0x44d   :  { %1069 = vmatprep.subr.bf16.mxu0 %v1230_v6 }
 0x502   :  { %v337_v17 = vpop.f32.mrb[0].mxu0 }
 0x503   :  { %v338_v18 = vadd.f32 %v337_v17, %v267_v16  ;;  %v1068_v19 = vpop.f32.mrb[1].mxu0  ;;  %v1176_v16 = vld [vmem:[%s1601_s7 + $0x84] ss:$28 sps:$4 sm:$0xff]  }
 0x504   :  { %v1174_v17 = vld [vmem:[%s1601_s7 + $0x80] ss:$28 sps:$4 sm:$0xff]  }
 0x505   :  { %341 = vadd.xlane.f32.xlu0 %v338_v18  ;;  %v1180_v19 = vld [vmem:[%s1601_s7 + $0xbc] ss:$28 sps:$4 sm:$0xff]  }
 0x592   :  { %v342_v28 = vpop.xlane.xlu0 %341 }
 0x593   :  { %v344_v29 = vmul.f32 0.0078125, %v342_v28  ;;  %v1192_v28 = vld [vmem:[%s1601_s7 + $0x164] ss:$28 sps:$4 sm:$0xff]  }
 0x595   :  { %v1409_v30 = vsub.f32 %v338_v18, %v344_v29  ;;  %v1177_v18 = vld [vmem:[%s1601_s7 + $0x88] ss:$28 sps:$4 sm:$0xff]   ;;  %v1190_v29 = vld [vmem:[%s1601_s7 + $0x160] ss:$28 sps:$4 sm:$0xff]  }
 0x597   :  { %v346_v31 = vmul.f32 %v1409_v30, %v1409_v30 }
 0x599   :  { %347 = vadd.xlane.f32.xlu1 %v346_v31  ;;  %v1196_v31 = vld [vmem:[%s1601_s7 + $0x19c] ss:$28 sps:$4 sm:$0xff]  }
 0x626   :  { %v348_v60 = vpop.xlane.xlu1 %347 }
 0x627   :  { %v349_v61 = vmul.f32 0.0078125, %v348_v60 }
 0x629   :  { %v350_v62 = vadd.f32 1e-05, %v349_v61 }
 0x62b   :  { %1202 = vrsqrt.f32 %v350_v62 }
 0x635   :  { %v1203_v0 = vpop.eup %1202 }
 0x636   :  { %v352_v2 = vmul.f32 %v1203_v0, %v1409_v30  ;;  %v1193_v30 = vld [vmem:[%s1601_s7 + $0x168] ss:$28 sps:$4 sm:$0xff]   ;;  %s1232_s7 = smov [#allocation2]  }
 0x637   :  { %s933_s8 = sshll.u32 %s1232_s7, 4  ;;  %s934_s8 = int_to_ptr.vmem [resolvable:$true] %s933_s8 }
 0x638   :  { %v357_v4 = vmul.f32 %v356_v63, %v352_v2  ;;  %s1204_s21 = scalar_lea.vmem %s934_s8, 896  ;;  %p1209_p1 = scmp.lt.s32.totalorder %s934_s8, %s934_s8 }
 0x639   :  { %p1205_p0 = scmp.ne.s32.totalorder %s934_s8, %s1204_s21  ;;  %p1210_p2 = scmp.lt.s32.totalorder %s1204_s21, %s1204_s21 }
 0x63a   :  { %v362_v5 = vadd.f32 %v361_v1, %v357_v4 }
 0x63b   :  { %p1211_p3 = por %p1210_p2, %p1209_p1 }
 0x63c   :  { %vm363_vm5 = vcmp.gt.f32.partialorder %v362_v5, 0.0  ;;  %v364_v7 = vmul.f32 0.2, %v362_v5 }
 0x63d   :  { %p1212_p4 = pnand %p1211_p3, %p1205_p0 }
 0x63e   :  { %v365_v9 = vsel %vm363_vm5, %v362_v5, %v364_v7 }
 0x63f   :  { %v366_v13 = vpack.c.bf16 %v365_v9, %v365_v9 }
 0x641   :  { %789 = vmatmul.mubr.bf16.vlgmr.msra.gmra.mrb[4].mxu1 %v366_v13  ;;  %830 = vmatmul.mubr.bf16.vlgmr.msra.gmra.mrb[4].mxu0 %v366_v13 }
 0x642   :  { %839 = vmatpush1.bf16.msra.mxu1 %v1166_v8  ;;  %1070 = vmatpush3.bf16.msra.mxu0 %v1169_v12 }
 0x643   :  { %840 = vmatprep.subr.bf16.mxu1 %v1172_v14  ;;  %1071 = vmatprep.subr.bf16.mxu0 %v1230_v6 }
 0x644   :  { %870 = vmatprep.mubr.bf16.mxu1 %v1231_v58  ;;  %1085 = vmatprep.mubr.msk.bf16.mxu0 %vm1229_vm0, %v1230_v6 }
 0x646   :  { %841 = vmatpush1.bf16.msra.mxu1 %v1170_v15  ;;  %1072 = vmatpush3.bf16.msra.mxu0 %v1173_v3 }
 0x647   :  { %842 = vmatprep.subr.bf16.mxu1 %v1176_v16  ;;  %1073 = vmatprep.subr.bf16.mxu0 %v1230_v6 }
 0x64a   :  { %843 = vmatpush1.bf16.msra.mxu1 %v1174_v17  ;;  %1074 = vmatpush3.bf16.msra.mxu0 %v1177_v18 }
 0x64b   :  { %844 = vmatprep.subr.bf16.mxu1 %v1180_v19  ;;  %1075 = vmatprep.subr.bf16.mxu0 %v1230_v6 }
 0x64e   :  { %845 = vmatpush1.bf16.msra.mxu1 %v1178_v20  ;;  %1076 = vmatpush3.bf16.msra.mxu0 %v1181_v21 }
 0x64f   :  { %846 = vmatprep.subr.bf16.mxu1 %v1184_v22  ;;  %1077 = vmatprep.subr.bf16.mxu0 %v1230_v6 }
 0x652   :  { %847 = vmatpush1.bf16.msra.mxu1 %v1182_v23  ;;  %1078 = vmatpush3.bf16.msra.mxu0 %v1185_v24 }
 0x653   :  { %848 = vmatprep.subr.bf16.mxu1 %v1188_v25  ;;  %1079 = vmatprep.subr.bf16.mxu0 %v1230_v6 }
 0x656   :  { %849 = vmatpush1.bf16.msra.mxu1 %v1186_v26  ;;  %1080 = vmatpush3.bf16.msra.mxu0 %v1189_v27 }
 0x657   :  { %850 = vmatprep.subr.bf16.mxu1 %v1192_v28  ;;  %1081 = vmatprep.subr.bf16.mxu0 %v1230_v6 }
 0x65a   :  { %851 = vmatpush1.bf16.msra.mxu1 %v1190_v29  ;;  %1082 = vmatpush3.bf16.msra.mxu0 %v1193_v30 }
 0x65b   :  { %852 = vmatprep.subr.bf16.mxu1 %v1196_v31  ;;  %1083 = vmatprep.subr.bf16.mxu0 %v1230_v6 }
 0x65e   :  { %853 = vmatpush1.bf16.msra.mxu1 %v1194_v34  ;;  %1084 = vmatpush3.bf16.msra.mxu0 %v1197_v35 }
 0x661   :  { %871 = vmatmul.mubr.bf16.vlgmr.msra.gmra.mrb[8].mxu1 %v366_v13  ;;  %1086 = vmatmul.mubr.bf16.vlgmr.msra.gmra.mrb[8].mxu0 %v366_v13 }
 0x714   :  { %v790_v42 = vpop.f32.mrb[4].mxu1  ;;  %v831_v43 = vpop.f32.mrb[4].mxu0 }
 0x715   :  { %v791_v6 = vadd.f32 %v790_v42, %v436_v38  ;;  %v832_v44 = vadd.f32 %v831_v43, %v444_v39  ;;  %v792_v45 = vpop.f32.mrb[5].mxu1  ;;  %v833_v46 = vpop.f32.mrb[5].mxu0 }
 0x716   :  { %v793_v47 = vadd.f32 %v792_v45, %v440_v40  ;;  %v834_v48 = vadd.f32 %v833_v46, %v448_v41  ;;  %v794_v49 = vpop.f32.mrb[6].mxu1  ;;  %v835_v50 = vpop.f32.mrb[6].mxu0 }
 0x717   :  { %919 = vst [vmem:[#allocation2] sm:$0xff] %v791_v6  ;;  %921 = vst [vmem:[#allocation2 + $0x10] sm:$0xff] %v832_v44  ;;  %v795_v51 = vpop.f32.mrb[7].mxu1  ;;  %v836_v52 = vpop.f32.mrb[7].mxu0 }
 0x718   :  { %920 = vst [vmem:[#allocation2 + $0x8] sm:$0xff] %v793_v47  ;;  %922 = vst [vmem:[#allocation2 + $0x18] sm:$0xff] %v834_v48 }
 0x734   :  { %v872_v56 = vpop.f32.mrb[8].mxu1  ;;  %v913_v57 = vpop.f32.mrb[8].mxu0 }
 0x735   :  { %v873_v58 = vadd.f32 %v872_v56, %v452_v53  ;;  %v914_v59 = vadd.f32 %v913_v57, %v460_v54  ;;  %v874_v60 = vpop.f32.mrb[9].mxu1  ;;  %v1087_v61 = vpop.f32.mrb[9].mxu0 }
 0x736   :  { %v875_v62 = vadd.f32 %v874_v60, %v456_v55  ;;  %v876_v63 = vpop.f32.mrb[10].mxu1  ;;  %v916_v0 = vpop.f32.mrb[10].mxu0 }
 0x737   :  { %923 = vst [vmem:[#allocation2 + $0x20] sm:$0xff] %v873_v58  ;;  %926 = vst.msk [vmem:[#allocation2 + $0x30] sm:$0xff] %vm925_vm6, %v914_v59  ;;  %v877_v1 = vpop.f32.mrb[11].mxu1  ;;  %v1088_v10 = vpop.f32.mrb[11].mxu0 }
 0x738   :  { %924 = vst [vmem:[#allocation2 + $0x28] sm:$0xff] %v875_v62 }
 0x739   :  { %1215 = shalt.err (!%p1212_p4)
}
 0x73a   :  { %s1216_s24 = scalar_lea.hbm %s1603_s9, 896 }
 0x73b   :  { %p1217_p5 = scmp.ne.s32.totalorder %s1603_s9, %s1216_s24  ;;  %p1220_p6 = scmp.lt.u32.totalorder %s1216_s24, %s1603_s9 }
 0x73d   :  { %p1222_p7 = pnand %p1220_p6, %p1217_p5 }
 0x73f   :  { %1225 = shalt.err (!%p1222_p7)
}
 0x740   :  { %936 = dma.vmem_to_hbm [thread:$0]  %s934_s8, 896, %s1603_s9, [#allocation3]  }
 0x741   :  { %1226 = dma.done.wait [#allocation3], 896  }
 0x742   :  { %1227 = vsyncadd [#allocation3], 4294966400 }
 0x743   :  { %940 = vsyncpa [#allocation3], 1 }

</bundles_post_ra>
